<compile_context>
chip_gen: v6e
topology: v6e:2x2x1
jax: 0.10.0
libtpu: 0.0.40
codegen_flags: <defaults>
</compile_context>

<pallas_src>
import functools

import jax
import jax.numpy as jnp
from jax.experimental import pallas as pl
from jax.experimental.pallas import tpu as pltpu


def _linear_leakyrelu_kernel(w_ref, b_ref, x_ref, o_ref, *, negative_slope):
    """Lane-dense Linear(3,4) + LeakyReLU.

    w_ref : (N, K) f32 in SMEM   (PyTorch layout, read as scalars)
    b_ref : (N,)   f32 in SMEM
    x_ref : (K, TM) f32 in VMEM  (M on the lane axis)
    o_ref : (N, TM) f32 in VMEM  (M on the lane axis)
    """
    n_out, k_in = w_ref.shape

    # Hoist the K input rows (lane-dense (1, TM) vectors); reused by every
    # output row.
    x_rows = [x_ref[k:k + 1, :] for k in range(k_in)]

    # Fully unrolled VPU broadcast multiply-adds: 12 mul + 12 add per tile.
    for n in range(n_out):
        v1 = x_rows[0] * w_ref[n, 0]
        for k in range(1, k_in):
            v1 = v1 + x_rows[k] * w_ref[n, k]
        v1 = v1 + b_ref[n]
        # LeakyReLU, kept in f32 (v5e has no bf16 VPU); cast only at the store.
        v4 = jnp.where(v1 > 0, v1, v1 * negative_slope)
        o_ref[n:n + 1, :] = v4.astype(o_ref.dtype)


def linear_leakyrelu(x, weight, bias, negative_slope, *, tm=32768):
    """x: (M, K), weight: (N, K) (PyTorch layout), bias: (N,). Returns (M, N)."""
    M, K = x.shape
    N = weight.shape[0]

    # Layout plumbing only: put the batch axis on the lane axis so every
    # in-kernel load/store is full lane width.
    xt = x.T  # (K, M)

    kernel = functools.partial(
        _linear_leakyrelu_kernel, negative_slope=negative_slope
    )

    if M <= tm:
        # Small/moderate batch: single grid point, blocks = full arrays
        # (full-array exception to the (8,128) rule). Minimum launch overhead.
        tm_eff = M
        grid = (1,)
    else:
        # Large batch: tile M (the lane axis) only. tm must be a multiple of
        # 128; weight/bias are SMEM-resident across all grid steps and the
        # x/out tile DMAs are pipelined with the default double buffering.
        assert tm % 128 == 0, "tile size along M must be a multiple of 128"
        tm_eff = tm
        grid = (pl.cdiv(M, tm_eff),)

    out_t = pl.pallas_call(
        kernel,
        out_shape=jax.ShapeDtypeStruct((N, M), x.dtype),
        grid=grid,
        in_specs=[
            pl.BlockSpec(memory_space=pltpu.MemorySpace.SMEM),   # weight (N, K)
            pl.BlockSpec(memory_space=pltpu.MemorySpace.SMEM),   # bias   (N,)
            pl.BlockSpec((K, tm_eff), lambda i: (0, i)),         # x^T tile
        ],
        out_specs=pl.BlockSpec((N, tm_eff), lambda i: (0, i)),   # lane-dense out
        compiler_params=pltpu.CompilerParams(
            # ~4 MiB double-buffered footprint at tm=32768: fits the scoped
            # VMEM default on v5e (16 MiB), v6e and v7x (32 MiB) — no
            # vmem_limit_bytes override required.
            dimension_semantics=("parallel",),
        ),
    )(weight, bias, xt)

    # Free-ish wrapper transpose back to the module's (M, N) output layout.
    return out_t.T


if __name__ == "__main__":
    key = jax.random.PRNGKey(0)
    kx, kw, kb = jax.random.split(key, 3)

    negative_slope = 0.1

    # Module shapes: Linear(3, 4); input x of shape (2, 3).
    x = jax.random.normal(kx, (2, 3), dtype=jnp.float32)
    # Deterministic "init" mimicking nn.Linear param shapes (4, 3) and (4,)
    weight = jax.random.normal(kw, (4, 3), dtype=jnp.float32) * 0.5
    bias = jax.random.normal(kb, (4,), dtype=jnp.float32) * 0.1

    out = jax.block_until_ready(linear_leakyrelu(x, weight, bias, negative_slope))

    # Reference check in plain JAX
    ref_v1 = x @ weight.T + bias
    ref = jnp.where(ref_v1 > 0, ref_v1, ref_v1 * negative_slope)
    assert out.shape == (2, 4)
    assert jnp.allclose(out, ref, atol=1e-5, rtol=1e-5)

    # Also sanity-check the tiled, lane-dense large-M path (multiple grid
    # steps) at a modest size.
    xb = jax.random.normal(kx, (512, 3), dtype=jnp.float32)
    outb = jax.block_until_ready(
        linear_leakyrelu(xb, weight, bias, negative_slope, tm=128)
    )
    refb_v1 = xb @ weight.T + bias
    refb = jnp.where(refb_v1 > 0, refb_v1, refb_v1 * negative_slope)
    assert jnp.allclose(outb, refb, atol=1e-5, rtol=1e-5)

    print("KERNEL_OK")
</pallas_src>

<mosaic_0001>
module attributes {stable_mosaic.version = 11 : i64} {
  func.func @_linear_leakyrelu_kernel(%arg0: i32, %arg1: memref<4x3xf32, #tpu.memory_space<smem>>, %arg2: memref<4xf32, #tpu.memory_space<smem>>, %arg3: memref<3x2xf32, #tpu.memory_space<vmem>>, %arg4: memref<4x2xf32, #tpu.memory_space<vmem>>) attributes {dimension_semantics = [#tpu.dimension_semantics<parallel>], iteration_bounds = array<i64: 1>, scalar_prefetch = 0 : i64, scratch_operands = 0 : i64, tpu.core_type = #tpu.core_type<tc>, window_params = [{transform_indices = @transform_0, window_bounds = array<i64: 4, 3>}, {transform_indices = @transform_1, window_bounds = array<i64: 4>}, {transform_indices = @transform_2, window_bounds = array<i64: 3, 2>}, {transform_indices = @transform_3, window_bounds = array<i64: 4, 2>}]} {
    %c0 = arith.constant 0 : index
    %c0_0 = arith.constant 0 : index
    %0 = vector.load %arg3[%c0, %c0_0] : memref<3x2xf32, #tpu.memory_space<vmem>>, vector<1x2xf32>
    %c1 = arith.constant 1 : index
    %c0_1 = arith.constant 0 : index
    %1 = vector.load %arg3[%c1, %c0_1] : memref<3x2xf32, #tpu.memory_space<vmem>>, vector<1x2xf32>
    %c2 = arith.constant 2 : index
    %c0_2 = arith.constant 0 : index
    %2 = vector.load %arg3[%c2, %c0_2] : memref<3x2xf32, #tpu.memory_space<vmem>>, vector<1x2xf32>
    %c0_3 = arith.constant 0 : index
    %c0_4 = arith.constant 0 : index
    %3 = memref.load %arg1[%c0_3, %c0_4] : memref<4x3xf32, #tpu.memory_space<smem>>
    %4 = vector.broadcast %3 : f32 to vector<1x2xf32>
    %5 = arith.mulf %0, %4 : vector<1x2xf32>
    %c0_5 = arith.constant 0 : index
    %c1_6 = arith.constant 1 : index
    %6 = memref.load %arg1[%c0_5, %c1_6] : memref<4x3xf32, #tpu.memory_space<smem>>
    %7 = vector.broadcast %6 : f32 to vector<1x2xf32>
    %8 = arith.mulf %1, %7 : vector<1x2xf32>
    %9 = arith.addf %5, %8 : vector<1x2xf32>
    %c0_7 = arith.constant 0 : index
    %c2_8 = arith.constant 2 : index
    %10 = memref.load %arg1[%c0_7, %c2_8] : memref<4x3xf32, #tpu.memory_space<smem>>
    %11 = vector.broadcast %10 : f32 to vector<1x2xf32>
    %12 = arith.mulf %2, %11 : vector<1x2xf32>
    %13 = arith.addf %9, %12 : vector<1x2xf32>
    %c0_9 = arith.constant 0 : index
    %14 = memref.load %arg2[%c0_9] : memref<4xf32, #tpu.memory_space<smem>>
    %15 = vector.broadcast %14 : f32 to vector<1x2xf32>
    %16 = arith.addf %13, %15 : vector<1x2xf32>
    %cst = arith.constant 0.000000e+00 : f32
    %17 = vector.broadcast %cst : f32 to vector<1x2xf32>
    %18 = arith.cmpf ogt, %16, %17 : vector<1x2xf32>
    %cst_10 = arith.constant 1.000000e-01 : f32
    %19 = vector.broadcast %cst_10 : f32 to vector<1x2xf32>
    %20 = arith.mulf %16, %19 : vector<1x2xf32>
    %21 = arith.select %18, %16, %20 : vector<1x2xi1>, vector<1x2xf32>
    %c0_11 = arith.constant 0 : index
    %c0_12 = arith.constant 0 : index
    %22 = vector.load %arg4[%c0_11, %c0_12] : memref<4x2xf32, #tpu.memory_space<vmem>>, vector<1x2xf32>
    tpu.vector_store %arg4[%c0_11, %c0_12], %21 {strides = array<i32>} : memref<4x2xf32, #tpu.memory_space<vmem>>, vector<1x2xf32>,
    %c1_13 = arith.constant 1 : index
    %c0_14 = arith.constant 0 : index
    %23 = memref.load %arg1[%c1_13, %c0_14] : memref<4x3xf32, #tpu.memory_space<smem>>
    %24 = vector.broadcast %23 : f32 to vector<1x2xf32>
    %25 = arith.mulf %0, %24 : vector<1x2xf32>
    %c1_15 = arith.constant 1 : index
    %c1_16 = arith.constant 1 : index
    %26 = memref.load %arg1[%c1_15, %c1_16] : memref<4x3xf32, #tpu.memory_space<smem>>
    %27 = vector.broadcast %26 : f32 to vector<1x2xf32>
    %28 = arith.mulf %1, %27 : vector<1x2xf32>
    %29 = arith.addf %25, %28 : vector<1x2xf32>
    %c1_17 = arith.constant 1 : index
    %c2_18 = arith.constant 2 : index
    %30 = memref.load %arg1[%c1_17, %c2_18] : memref<4x3xf32, #tpu.memory_space<smem>>
    %31 = vector.broadcast %30 : f32 to vector<1x2xf32>
    %32 = arith.mulf %2, %31 : vector<1x2xf32>
    %33 = arith.addf %29, %32 : vector<1x2xf32>
    %c1_19 = arith.constant 1 : index
    %34 = memref.load %arg2[%c1_19] : memref<4xf32, #tpu.memory_space<smem>>
    %35 = vector.broadcast %34 : f32 to vector<1x2xf32>
    %36 = arith.addf %33, %35 : vector<1x2xf32>
    %cst_20 = arith.constant 0.000000e+00 : f32
    %37 = vector.broadcast %cst_20 : f32 to vector<1x2xf32>
    %38 = arith.cmpf ogt, %36, %37 : vector<1x2xf32>
    %cst_21 = arith.constant 1.000000e-01 : f32
    %39 = vector.broadcast %cst_21 : f32 to vector<1x2xf32>
    %40 = arith.mulf %36, %39 : vector<1x2xf32>
    %41 = arith.select %38, %36, %40 : vector<1x2xi1>, vector<1x2xf32>
    %c1_22 = arith.constant 1 : index
    %c0_23 = arith.constant 0 : index
    %42 = vector.load %arg4[%c1_22, %c0_23] : memref<4x2xf32, #tpu.memory_space<vmem>>, vector<1x2xf32>
    tpu.vector_store %arg4[%c1_22, %c0_23], %41 {strides = array<i32>} : memref<4x2xf32, #tpu.memory_space<vmem>>, vector<1x2xf32>,
    %c2_24 = arith.constant 2 : index
    %c0_25 = arith.constant 0 : index
    %43 = memref.load %arg1[%c2_24, %c0_25] : memref<4x3xf32, #tpu.memory_space<smem>>
    %44 = vector.broadcast %43 : f32 to vector<1x2xf32>
    %45 = arith.mulf %0, %44 : vector<1x2xf32>
    %c2_26 = arith.constant 2 : index
    %c1_27 = arith.constant 1 : index
    %46 = memref.load %arg1[%c2_26, %c1_27] : memref<4x3xf32, #tpu.memory_space<smem>>
    %47 = vector.broadcast %46 : f32 to vector<1x2xf32>
    %48 = arith.mulf %1, %47 : vector<1x2xf32>
    %49 = arith.addf %45, %48 : vector<1x2xf32>
    %c2_28 = arith.constant 2 : index
    %c2_29 = arith.constant 2 : index
    %50 = memref.load %arg1[%c2_28, %c2_29] : memref<4x3xf32, #tpu.memory_space<smem>>
    %51 = vector.broadcast %50 : f32 to vector<1x2xf32>
    %52 = arith.mulf %2, %51 : vector<1x2xf32>
    %53 = arith.addf %49, %52 : vector<1x2xf32>
    %c2_30 = arith.constant 2 : index
    %54 = memref.load %arg2[%c2_30] : memref<4xf32, #tpu.memory_space<smem>>
    %55 = vector.broadcast %54 : f32 to vector<1x2xf32>
    %56 = arith.addf %53, %55 : vector<1x2xf32>
    %cst_31 = arith.constant 0.000000e+00 : f32
    %57 = vector.broadcast %cst_31 : f32 to vector<1x2xf32>
    %58 = arith.cmpf ogt, %56, %57 : vector<1x2xf32>
    %cst_32 = arith.constant 1.000000e-01 : f32
    %59 = vector.broadcast %cst_32 : f32 to vector<1x2xf32>
    %60 = arith.mulf %56, %59 : vector<1x2xf32>
    %61 = arith.select %58, %56, %60 : vector<1x2xi1>, vector<1x2xf32>
    %c2_33 = arith.constant 2 : index
    %c0_34 = arith.constant 0 : index
    %62 = vector.load %arg4[%c2_33, %c0_34] : memref<4x2xf32, #tpu.memory_space<vmem>>, vector<1x2xf32>
    tpu.vector_store %arg4[%c2_33, %c0_34], %61 {strides = array<i32>} : memref<4x2xf32, #tpu.memory_space<vmem>>, vector<1x2xf32>,
    %c3 = arith.constant 3 : index
    %c0_35 = arith.constant 0 : index
    %63 = memref.load %arg1[%c3, %c0_35] : memref<4x3xf32, #tpu.memory_space<smem>>
    %64 = vector.broadcast %63 : f32 to vector<1x2xf32>
    %65 = arith.mulf %0, %64 : vector<1x2xf32>
    %c3_36 = arith.constant 3 : index
    %c1_37 = arith.constant 1 : index
    %66 = memref.load %arg1[%c3_36, %c1_37] : memref<4x3xf32, #tpu.memory_space<smem>>
    %67 = vector.broadcast %66 : f32 to vector<1x2xf32>
    %68 = arith.mulf %1, %67 : vector<1x2xf32>
    %69 = arith.addf %65, %68 : vector<1x2xf32>
    %c3_38 = arith.constant 3 : index
    %c2_39 = arith.constant 2 : index
    %70 = memref.load %arg1[%c3_38, %c2_39] : memref<4x3xf32, #tpu.memory_space<smem>>
    %71 = vector.broadcast %70 : f32 to vector<1x2xf32>
    %72 = arith.mulf %2, %71 : vector<1x2xf32>
    %73 = arith.addf %69, %72 : vector<1x2xf32>
    %c3_40 = arith.constant 3 : index
    %74 = memref.load %arg2[%c3_40] : memref<4xf32, #tpu.memory_space<smem>>
    %75 = vector.broadcast %74 : f32 to vector<1x2xf32>
    %76 = arith.addf %73, %75 : vector<1x2xf32>
    %cst_41 = arith.constant 0.000000e+00 : f32
    %77 = vector.broadcast %cst_41 : f32 to vector<1x2xf32>
    %78 = arith.cmpf ogt, %76, %77 : vector<1x2xf32>
    %cst_42 = arith.constant 1.000000e-01 : f32
    %79 = vector.broadcast %cst_42 : f32 to vector<1x2xf32>
    %80 = arith.mulf %76, %79 : vector<1x2xf32>
    %81 = arith.select %78, %76, %80 : vector<1x2xi1>, vector<1x2xf32>
    %c3_43 = arith.constant 3 : index
    %c0_44 = arith.constant 0 : index
    %82 = vector.load %arg4[%c3_43, %c0_44] : memref<4x2xf32, #tpu.memory_space<vmem>>, vector<1x2xf32>
    tpu.vector_store %arg4[%c3_43, %c0_44], %81 {strides = array<i32>} : memref<4x2xf32, #tpu.memory_space<vmem>>, vector<1x2xf32>,
    return
  }
  func.func @transform_0(%arg0: i32) -> (i32, i32) {
    %c0_i32 = arith.constant 0 : i32
    %c0_i32_0 = arith.constant 0 : i32
    %c0_i32_1 = arith.constant 0 : i32
    return %c0_i32, %c0_i32_0 : i32, i32
  }
  func.func @transform_1(%arg0: i32) -> i32 {
    %c0_i32 = arith.constant 0 : i32
    %c0_i32_0 = arith.constant 0 : i32
    return %c0_i32 : i32
  }
  func.func @transform_2(%arg0: i32) -> (i32, i32) {
    %c0_i32 = arith.constant 0 : i32
    %c0_i32_0 = arith.constant 0 : i32
    return %c0_i32, %arg0 : i32, i32
  }
  func.func @transform_3(%arg0: i32) -> (i32, i32) {
    %c0_i32 = arith.constant 0 : i32
    %c0_i32_0 = arith.constant 0 : i32
    return %c0_i32, %arg0 : i32, i32
  }
}

</mosaic_0001>

<bundles_post_ra>
// kernel: tpu_custom_call.1
= control target key start
LH: loop header
LB: loop body
LE: loop exit
PB: predicated region body
PF: predicated region fallthrough
CT: control target
= control target key end

     0   :  { %8 = vsyncpa [#allocation3], 0  ;;  %s224_s0 = inlined_call_operand.vmem [shape: f32[4,3], index: 0, kind: input, shape index: {}]   ;;  %s225_s1 = inlined_call_operand.vmem [shape: f32[4], index: 1, kind: input, shape index: {}]   ;;  %s226_s2 = inlined_call_operand.vmem [shape: f32[3,2], index: 2, kind: input, shape index: {}]   ;;  %s227_s3 = inlined_call_operand.vmem [shape: f32[4,2], index: 3, kind: output, shape index: {}]  }
   0x1   :  { %s16_s14 = sshll.u32 %s224_s0, 4  ;;  %s17_s14 = int_to_ptr.vmem [resolvable:$true] %s16_s14 }
   0x2   :  { %9 = vsyncpa [#allocation5], 0  ;;  %s26_s17 = sshll.u32 %s225_s1, 4  ;;  %s137_s18 = scalar_lea.vmem %s17_s14, 64  ;;  %s27_s17 = int_to_ptr.vmem [resolvable:$true] %s26_s17 }
   0x3   :  { %p138_p0 = scmp.ne.s32.totalorder %s17_s14, %s137_s18  ;;  %p142_p1 = scmp.lt.s32.totalorder %s17_s14, %s17_s14 }
   0x4   :  { %p143_p2 = scmp.lt.s32.totalorder %s137_s18, %s137_s18 }
   0x6   :  { %p144_p3 = por %p143_p2, %p142_p1 }
   0x8   :  { %p145_p4 = pnand %p144_p3, %p138_p0 }
   0xa   :  { %148 = shalt.err (!%p145_p4)
}
   0xb   :  { %s165_s19 = smov [#allocation2]   ;;  %s149_s20 = scalar_lea.vmem %s27_s17, 16 }
   0xc   :  { %19 = dma.vmem_to_smem %s17_s14, 64, %s165_s19, [#allocation3]  }
   0xd   :  { %p150_p5 = scmp.ne.s32.totalorder %s27_s17, %s149_s20  ;;  %p154_p6 = scmp.lt.s32.totalorder %s27_s17, %s27_s17 }
   0xe   :  { %p155_p7 = scmp.lt.s32.totalorder %s149_s20, %s149_s20 }
  0x10   :  { %p156_p8 = por %p155_p7, %p154_p6 }
  0x12   :  { %p157_p9 = pnand %p156_p8, %p150_p5 }
  0x14   :  { %160 = shalt.err (!%p157_p9)
}
  0x15   :  { %s166_s0 = smov [#allocation4]  }
  0x16   :  { %29 = dma.vmem_to_smem %s27_s17, 16, %s166_s0, [#allocation5]  }
  0x17   :  { %161 = dma.done.wait [#allocation3], 64  }
  0x18   :  { %162 = vsyncadd [#allocation3], 4294967232 }
  0x19   :  { %163 = dma.done.wait [#allocation5], 16  }
  0x1a   :  { %164 = vsyncadd [#allocation5], 4294967280 }
  0x1b   :  { %38 = sfence }
  0x1c   :  { %s42_s1 = sld [smem:[#allocation2]]  ;;  %v39_v0 = vld [vmem:[%s226_s2] sm:$0x1]  ;;  %v40_v1 = vld [vmem:[%s226_s2 + $0x1] sm:$0x1]  ;;  %vm59_vm0 = vcmask 8192  }
  0x1d   :  { %s121_s21 = sld [smem:[#allocation2 + $0x1]]  ;;  %v41_v2 = vld [vmem:[%s226_s2 + $0x2] sm:$0x1] }
  0x1e   :  { %s122_s22 = sld [smem:[#allocation2 + $0x2]] }
  0x1f   :  { %s53_s23 = sld [smem:[#allocation4]] }
  0x20   :  { %s123_s26 = sld [smem:[#allocation2 + $0x80]] }
  0x21   :  { %s124_s29 = sld [smem:[#allocation2 + $0x81]] }
  0x22   :  { %v43_v3 = vstv %s42_s1  ;;  %s125_s5 = sld [smem:[#allocation2 + $0x82]] }
  0x23   :  { %v44_v4 = vmul.f32 %v43_v3, %v39_v0  ;;  %v46_v5 = vstv %s121_s21  ;;  %s202_s6 = sld [smem:[#allocation4 + $0x1]] }
  0x24   :  { %v47_v6 = vmul.f32 %v46_v5, %v40_v1  ;;  %v50_v7 = vstv %s122_s22  ;;  %s127_s7 = sld [smem:[#allocation2 + $0x100]] }
  0x25   :  { %v51_v8 = vmul.f32 %v50_v7, %v41_v2  ;;  %s128_s8 = sld [smem:[#allocation2 + $0x101]]  ;;  %v54_v11 = vstv %s53_s23 }
  0x26   :  { %v48_v9 = vadd.f32 %v47_v6, %v44_v4  ;;  %v62_v10 = vstv %s123_s26  ;;  %s129_s9 = sld [smem:[#allocation2 + $0x102]] }
  0x27   :  { %v63_v12 = vmul.f32 %v62_v10, %v39_v0  ;;  %v65_v13 = vstv %s124_s29  ;;  %s204_s10 = sld [smem:[#allocation4 + $0x2]] }
  0x28   :  { %v52_v14 = vadd.f32 %v51_v8, %v48_v9  ;;  %v66_v15 = vmul.f32 %v65_v13, %v40_v1  ;;  %v69_v16 = vstv %s125_s5  ;;  %s131_s2 = sld [smem:[#allocation2 + $0x180]] }
  0x29   :  { %v70_v17 = vmul.f32 %v69_v16, %v41_v2  ;;  %s132_s11 = sld [smem:[#allocation2 + $0x181]]  ;;  %v73_v21 = vstv %s202_s6 }
  0x2a   :  { %v55_v18 = vadd.f32 %v54_v11, %v52_v14  ;;  %v67_v19 = vadd.f32 %v66_v15, %v63_v12  ;;  %v80_v20 = vstv %s127_s7  ;;  %s133_s12 = sld [smem:[#allocation2 + $0x182]] }
  0x2b   :  { %v81_v22 = vmul.f32 %v80_v20, %v39_v0  ;;  %v83_v23 = vstv %s128_s8  ;;  %s134_s13 = sld [smem:[#allocation4 + $0x3]] }
  0x2c   :  { %vm56_vm1 = vcmp.gt.f32.partialorder %v55_v18, 0.0  ;;  %v57_v24 = vmul.f32 0.1, %v55_v18  ;;  %v71_v25 = vadd.f32 %v70_v17, %v67_v19  ;;  %v84_v26 = vmul.f32 %v83_v23, %v40_v1 }
  0x2d   :  { %v87_v27 = vstv %s129_s9  ;;  %v91_v32 = vstv %s204_s10 }
  0x2e   :  { %v58_v28 = vsel %vm56_vm1, %v55_v18, %v57_v24  ;;  %v74_v29 = vadd.f32 %v73_v21, %v71_v25  ;;  %v85_v30 = vadd.f32 %v84_v26, %v81_v22  ;;  %v88_v31 = vmul.f32 %v87_v27, %v41_v2 }
  0x2f   :  { %60 = vst.msk [vmem:[%s227_s3] sm:$0x1] %vm59_vm0, %v58_v28  ;;  %v98_v33 = vstv %s131_s2  ;;  %v101_v34 = vstv %s132_s11 }
  0x30   :  { %vm75_vm2 = vcmp.gt.f32.partialorder %v74_v29, 0.0  ;;  %v76_v35 = vmul.f32 0.1, %v74_v29  ;;  %v89_v36 = vadd.f32 %v88_v31, %v85_v30  ;;  %v99_v37 = vmul.f32 %v98_v33, %v39_v0 }
  0x31   :  { %v102_v38 = vmul.f32 %v101_v34, %v40_v1  ;;  %v105_v39 = vstv %s133_s12  ;;  %v109_v45 = vstv %s134_s13 }
  0x32   :  { %v77_v40 = vsel %vm75_vm2, %v74_v29, %v76_v35  ;;  %v92_v41 = vadd.f32 %v91_v32, %v89_v36  ;;  %v106_v42 = vmul.f32 %v105_v39, %v41_v2 }
  0x33   :  { %78 = vst.msk [vmem:[%s227_s3 + $0x1] sm:$0x1] %vm59_vm0, %v77_v40  ;;  %v103_v43 = vadd.f32 %v102_v38, %v99_v37 }
  0x34   :  { %vm93_vm3 = vcmp.gt.f32.partialorder %v92_v41, 0.0  ;;  %v94_v44 = vmul.f32 0.1, %v92_v41 }
  0x35   :  { %v107_v46 = vadd.f32 %v106_v42, %v103_v43 }
  0x36   :  { %v95_v47 = vsel %vm93_vm3, %v92_v41, %v94_v44 }
  0x37   :  { %96 = vst.msk [vmem:[%s227_s3 + $0x2] sm:$0x1] %vm59_vm0, %v95_v47  ;;  %v110_v48 = vadd.f32 %v109_v45, %v107_v46 }
  0x39   :  { %vm111_vm4 = vcmp.gt.f32.partialorder %v110_v48, 0.0  ;;  %v112_v49 = vmul.f32 0.1, %v110_v48 }
  0x3b   :  { %v113_v50 = vsel %vm111_vm4, %v110_v48, %v112_v49 }
  0x3c   :  { %114 = vst.msk [vmem:[%s227_s3 + $0x3] sm:$0x1] %vm59_vm0, %v113_v50 }
  0x3d   :  { %119 = vsyncpa [#allocation3], 1 }
  0x3e   :  { %120 = vsyncpa [#allocation5], 1 }

</bundles_post_ra>
